<compile_context>
chip_gen: v7x
topology: tpu7x:2x2x1
jax: 0.10.0
libtpu: 0.0.40
codegen_flags: <defaults>
</compile_context>

<pallas_src>
from functools import lru_cache

import numpy as np
import jax
import jax.numpy as jnp
from jax.experimental import pallas as pl
from jax.experimental.pallas import tpu as pltpu


# ----------------------------------------------------------------------------
# Host-side constant preparation (cached per shape — costs nothing at steady
# state, addressing the "hoist and cache interp-matrix prep" feedback).
# ----------------------------------------------------------------------------
def _interp_matrix_np(out_size: int, in_size: int) -> np.ndarray:
    """Row-stochastic [out_size, in_size] matrix for 1-D bilinear resize with
    align_corners=True (PyTorch F.interpolate semantics)."""
    if out_size == 1:
        src = np.zeros((1,), dtype=np.float64)
    else:
        src = np.arange(out_size, dtype=np.float64) * (
            (in_size - 1) / (out_size - 1))
    i0 = np.clip(np.floor(src), 0, in_size - 1).astype(np.int64)
    i1 = np.clip(i0 + 1, 0, in_size - 1)
    frac = src - i0
    m = np.zeros((out_size, in_size), dtype=np.float64)
    rows = np.arange(out_size)
    m[rows, i0] += 1.0 - frac
    m[rows, i1] += frac
    return m


@lru_cache(maxsize=None)
def _upsample_matrix_T(Hs: int, Ws: int, Hx: int, Wx: int) -> jnp.ndarray:
    """kron(A_h, A_w)^T : (Hx*Wx, Hs*Ws), so up_flat = x_flat @ K^T."""
    ah = _interp_matrix_np(Hs, Hx)          # (Hs, Hx)
    aw = _interp_matrix_np(Ws, Wx)          # (Ws, Wx)
    kup = np.kron(ah, aw)                   # (Hs*Ws, Hx*Wx)
    return jnp.asarray(kup.T, dtype=jnp.float32)


def _pick_row_tile(Hs: int, Ws: int, target_lanes: int = 4096) -> int:
    """Largest useful TH dividing Hs with TH*Ws a multiple of 128 (or full)."""
    best = Hs
    for th in range(1, Hs + 1):
        if Hs % th != 0:
            continue
        if th == Hs or (th * Ws) % 128 == 0:
            best = th
            if th * Ws >= target_lanes:
                break
    return best


# ----------------------------------------------------------------------------
# Kernel
# ----------------------------------------------------------------------------
def _make_fpn_block_kernel(Cs: int):
    # For tiny Cs the 1x1 conv would use <1% of the MXU; do it as Cs
    # broadcast-FMAs on the VPU instead.  For large Cs use the MXU.
    use_vpu_conv = Cs <= 8

    def kernel(x_ref, skip_ref, kupT_ref, w_ref, b_ref, o_ref):
        # x_ref:    (1, Cp, Hx*Wx)     coarse pyramid feature (flattened spatial)
        # skip_ref: (1, Cs, TH*Ws)     skip-feature row tile
        # kupT_ref: (Hx*Wx, TH*Ws)     kron(A_h, A_w)^T column tile
        # w_ref:    (Cp, Cs)           1x1 conv weight
        # b_ref:    (Cp, 1)            1x1 conv bias
        # o_ref:    (1, Cp, TH*Ws)     lane-dense output tile
        up = jnp.dot(x_ref[0], kupT_ref[...],
                     preferred_element_type=jnp.float32)       # (Cp, TH*Ws)
        acc = up + b_ref[...]                                  # lane-broadcast bias
        if use_vpu_conv:
            w = w_ref[...]           # (Cp, Cs)
            sk = skip_ref[0]         # (Cs, TH*Ws)
            for s in range(Cs):      # static unroll; Cs is tiny
                acc = acc + w[:, s:s + 1] * sk[s:s + 1, :]
        else:
            acc = acc + jnp.dot(w_ref[...], skip_ref[0],
                                preferred_element_type=jnp.float32)
        o_ref[0] = acc.astype(o_ref.dtype)

    return kernel


def fpn_block(x_nchw, skip_nchw, weight, bias):
    """x_nchw: (N, Cp, Hx, Wx); skip_nchw: (N, Cs, Hs, Ws);
    weight: (Cp, Cs, 1, 1) PyTorch conv weight; bias: (Cp,).
    Returns (N, Cp, Hs, Ws) float32, matching FPNBlock.forward."""
    N, Cp, Hx, Wx = x_nchw.shape
    _, Cs, Hs, Ws = skip_nchw.shape

    # Contiguous trailing-dim merges only: no transposes, no extra HBM traffic.
    x_flat = x_nchw.reshape(N, Cp, Hx * Wx).astype(jnp.float32)
    skip_flat = skip_nchw.reshape(N, Cs, Hs * Ws).astype(jnp.float32)

    kupT = _upsample_matrix_T(Hs, Ws, Hx, Wx)            # (Hx*Wx, Hs*Ws)
    w = weight.reshape(Cp, Cs).astype(jnp.float32)       # (Cp, Cs)
    b = bias.reshape(Cp, 1).astype(jnp.float32)          # (Cp, 1)

    TH = _pick_row_tile(Hs, Ws)
    n_h = Hs // TH

    out_flat = pl.pallas_call(
        _make_fpn_block_kernel(Cs),
        out_shape=jax.ShapeDtypeStruct((N, Cp, Hs * Ws), jnp.float32),
        grid_spec=pltpu.PrefetchScalarGridSpec(
            num_scalar_prefetch=0,
            grid=(N, n_h),
            in_specs=[
                pl.BlockSpec((1, Cp, Hx * Wx), lambda n, h: (n, 0, 0)),
                pl.BlockSpec((1, Cs, TH * Ws), lambda n, h: (n, 0, h)),
                pl.BlockSpec((Hx * Wx, TH * Ws), lambda n, h: (0, h)),
                pl.BlockSpec((Cp, Cs), lambda n, h: (0, 0)),
                pl.BlockSpec((Cp, 1), lambda n, h: (0, 0)),
            ],
            out_specs=pl.BlockSpec((1, Cp, TH * Ws), lambda n, h: (n, 0, h)),
        ),
        compiler_params=pltpu.CompilerParams(
            dimension_semantics=("parallel", "parallel")),
    )(x_flat, skip_flat, kupT, w, b)

    return out_flat.reshape(N, Cp, Hs, Ws)


# ----------------------------------------------------------------------------
# Pure-JAX reference (gather-based bilinear, non-circular) for verification.
# ----------------------------------------------------------------------------
def _ref_fpn_block(x, skip, weight, bias):
    N, Cp, Hx, Wx = x.shape
    _, Cs, Hs, Ws = skip.shape

    def src_coords(out_size, in_size):
        if out_size == 1:
            return jnp.zeros((1,), jnp.float32)
        return jnp.arange(out_size, dtype=jnp.float32) * (
            (in_size - 1) / (out_size - 1))

    sy = src_coords(Hs, Hx)
    sx = src_coords(Ws, Wx)
    y0 = jnp.clip(jnp.floor(sy), 0, Hx - 1).astype(jnp.int32)
    y1 = jnp.clip(y0 + 1, 0, Hx - 1)
    x0 = jnp.clip(jnp.floor(sx), 0, Wx - 1).astype(jnp.int32)
    x1 = jnp.clip(x0 + 1, 0, Wx - 1)
    wy = (sy - y0.astype(jnp.float32))[None, None, :, None]
    wx = (sx - x0.astype(jnp.float32))[None, None, None, :]

    def gather(yi, xi):
        return x[:, :, yi, :][:, :, :, xi]

    up = ((1 - wy) * (1 - wx) * gather(y0, x0)
          + (1 - wy) * wx * gather(y0, x1)
          + wy * (1 - wx) * gather(y1, x0)
          + wy * wx * gather(y1, x1))

    wmat = weight.reshape(Cp, Cs)
    skc = jnp.einsum('ncl,pc->npl', skip.reshape(N, Cs, Hs * Ws), wmat)
    skc = skc.reshape(N, Cp, Hs, Ws) + bias[None, :, None, None]
    return up + skc


if __name__ == "__main__":
    key = jax.random.PRNGKey(0)
    k1, k2, k3, k4 = jax.random.split(key, 4)

    # Small shapes: pyramid_channels=8, skip_channels=4.
    N, Cp, Cs = 2, 8, 4
    Hx, Wx = 8, 8        # coarse pyramid feature
    Hs, Ws = 16, 16      # skip (target) spatial size

    x = jax.random.normal(k1, (N, Cp, Hx, Wx), dtype=jnp.float32)
    skip = jax.random.normal(k2, (N, Cs, Hs, Ws), dtype=jnp.float32)

    # Deterministic synthetic parameters for nn.Conv2d(Cs, Cp, kernel_size=1).
    weight = jax.random.normal(k3, (Cp, Cs, 1, 1), dtype=jnp.float32) * 0.1
    bias = jax.random.normal(k4, (Cp,), dtype=jnp.float32) * 0.1

    out = fpn_block(x, skip, weight, bias)
    out = jax.block_until_ready(out)

    ref = _ref_fpn_block(x, skip, weight, bias)

    assert out.shape == (N, Cp, Hs, Ws)
    assert bool(jnp.all(jnp.isfinite(out)))
    assert bool(jnp.allclose(out, ref, atol=2e-2, rtol=2e-2))
    print("KERNEL_OK")
</pallas_src>

<mosaic_0001>
module attributes {stable_mosaic.version = 11 : i64} {
  func.func @kernel(%arg0: i32, %arg1: i32, %arg2: memref<1x8x64xf32, #tpu.memory_space<vmem>>, %arg3: memref<1x4x256xf32, #tpu.memory_space<vmem>>, %arg4: memref<64x256xf32, #tpu.memory_space<vmem>>, %arg5: memref<8x4xf32, #tpu.memory_space<vmem>>, %arg6: memref<8x1xf32, #tpu.memory_space<vmem>>, %arg7: memref<1x8x256xf32, #tpu.memory_space<vmem>>) attributes {dimension_semantics = [#tpu.dimension_semantics<parallel>, #tpu.dimension_semantics<parallel>], iteration_bounds = array<i64: 2, 1>, scalar_prefetch = 0 : i64, scratch_operands = 0 : i64, tpu.core_type = #tpu.core_type<tc>, window_params = [{transform_indices = @transform_0, window_bounds = array<i64: 1, 8, 64>}, {transform_indices = @transform_1, window_bounds = array<i64: 1, 4, 256>}, {transform_indices = @transform_2, window_bounds = array<i64: 64, 256>}, {pipeline_mode = #tpu.pipeline_mode<synchronous>, transform_indices = @transform_3, window_bounds = array<i64: 8, 4>}, {pipeline_mode = #tpu.pipeline_mode<synchronous>, transform_indices = @transform_4, window_bounds = array<i64: 8, 1>}, {transform_indices = @transform_5, window_bounds = array<i64: 1, 8, 256>}]} {
    %c0 = arith.constant 0 : index
    %c0_0 = arith.constant 0 : index
    %c0_1 = arith.constant 0 : index
    %0 = vector.load %arg2[%c0, %c0_0, %c0_1] : memref<1x8x64xf32, #tpu.memory_space<vmem>>, vector<1x8x64xf32>
    %1 = vector.shape_cast %0 : vector<1x8x64xf32> to vector<8x64xf32>
    %c0_2 = arith.constant 0 : index
    %c0_3 = arith.constant 0 : index
    %2 = vector.load %arg4[%c0_2, %c0_3] : memref<64x256xf32, #tpu.memory_space<vmem>>, vector<64x256xf32>
    %cst = arith.constant dense<0.000000e+00> : vector<8x256xf32>
    %3 = tpu.matmul %1, %2, %cst {dimension_numbers = #tpu.dot_dimension_numbers<[1], [0], [0], [1], [0, 0, 1, 1], [], []>} : vector<8x64xf32>, vector<64x256xf32>, vector<8x256xf32> -> vector<8x256xf32>
    %c0_4 = arith.constant 0 : index
    %c0_5 = arith.constant 0 : index
    %4 = vector.load %arg6[%c0_4, %c0_5] : memref<8x1xf32, #tpu.memory_space<vmem>>, vector<8x1xf32>
    %5 = vector.broadcast %4 : vector<8x1xf32> to vector<8x256xf32>
    %6 = arith.addf %3, %5 : vector<8x256xf32>
    %c0_6 = arith.constant 0 : index
    %c0_7 = arith.constant 0 : index
    %7 = vector.load %arg5[%c0_6, %c0_7] : memref<8x4xf32, #tpu.memory_space<vmem>>, vector<8x4xf32>
    %c0_8 = arith.constant 0 : index
    %c0_9 = arith.constant 0 : index
    %c0_10 = arith.constant 0 : index
    %8 = vector.load %arg3[%c0_8, %c0_9, %c0_10] : memref<1x4x256xf32, #tpu.memory_space<vmem>>, vector<1x4x256xf32>
    %9 = vector.shape_cast %8 : vector<1x4x256xf32> to vector<4x256xf32>
    %10 = vector.extract_strided_slice %7 {offsets = [0, 0], sizes = [8, 1], strides = [1, 1]} : vector<8x4xf32> to vector<8x1xf32>
    %11 = vector.extract_strided_slice %9 {offsets = [0, 0], sizes = [1, 256], strides = [1, 1]} : vector<4x256xf32> to vector<1x256xf32>
    %12 = vector.broadcast %10 : vector<8x1xf32> to vector<8x256xf32>
    %13 = vector.broadcast %11 : vector<1x256xf32> to vector<8x256xf32>
    %14 = arith.mulf %12, %13 : vector<8x256xf32>
    %15 = arith.addf %6, %14 : vector<8x256xf32>
    %16 = vector.extract_strided_slice %7 {offsets = [0, 1], sizes = [8, 1], strides = [1, 1]} : vector<8x4xf32> to vector<8x1xf32>
    %17 = vector.extract_strided_slice %9 {offsets = [1, 0], sizes = [1, 256], strides = [1, 1]} : vector<4x256xf32> to vector<1x256xf32>
    %18 = vector.broadcast %16 : vector<8x1xf32> to vector<8x256xf32>
    %19 = vector.broadcast %17 : vector<1x256xf32> to vector<8x256xf32>
    %20 = arith.mulf %18, %19 : vector<8x256xf32>
    %21 = arith.addf %15, %20 : vector<8x256xf32>
    %22 = vector.extract_strided_slice %7 {offsets = [0, 2], sizes = [8, 1], strides = [1, 1]} : vector<8x4xf32> to vector<8x1xf32>
    %23 = vector.extract_strided_slice %9 {offsets = [2, 0], sizes = [1, 256], strides = [1, 1]} : vector<4x256xf32> to vector<1x256xf32>
    %24 = vector.broadcast %22 : vector<8x1xf32> to vector<8x256xf32>
    %25 = vector.broadcast %23 : vector<1x256xf32> to vector<8x256xf32>
    %26 = arith.mulf %24, %25 : vector<8x256xf32>
    %27 = arith.addf %21, %26 : vector<8x256xf32>
    %28 = vector.extract_strided_slice %7 {offsets = [0, 3], sizes = [8, 1], strides = [1, 1]} : vector<8x4xf32> to vector<8x1xf32>
    %29 = vector.extract_strided_slice %9 {offsets = [3, 0], sizes = [1, 256], strides = [1, 1]} : vector<4x256xf32> to vector<1x256xf32>
    %30 = vector.broadcast %28 : vector<8x1xf32> to vector<8x256xf32>
    %31 = vector.broadcast %29 : vector<1x256xf32> to vector<8x256xf32>
    %32 = arith.mulf %30, %31 : vector<8x256xf32>
    %33 = arith.addf %27, %32 : vector<8x256xf32>
    %c0_11 = arith.constant 0 : index
    %c0_12 = arith.constant 0 : index
    %c0_13 = arith.constant 0 : index
    %34 = vector.load %arg7[%c0_11, %c0_12, %c0_13] : memref<1x8x256xf32, #tpu.memory_space<vmem>>, vector<1x8x256xf32>
    %35 = vector.shape_cast %34 : vector<1x8x256xf32> to vector<8x256xf32>
    %36 = vector.shape_cast %33 : vector<8x256xf32> to vector<1x8x256xf32>
    tpu.vector_store %arg7[%c0_11, %c0_12, %c0_13], %36 {strides = array<i32>} : memref<1x8x256xf32, #tpu.memory_space<vmem>>, vector<1x8x256xf32>,
    return
  }
  func.func @transform_0(%arg0: i32, %arg1: i32) -> (i32, i32, i32) {
    %c0_i32 = arith.constant 0 : i32
    %c0_i32_0 = arith.constant 0 : i32
    %c0_i32_1 = arith.constant 0 : i32
    return %arg0, %c0_i32, %c0_i32_0 : i32, i32, i32
  }
  func.func @transform_1(%arg0: i32, %arg1: i32) -> (i32, i32, i32) {
    %c0_i32 = arith.constant 0 : i32
    %c0_i32_0 = arith.constant 0 : i32
    return %arg0, %c0_i32, %arg1 : i32, i32, i32
  }
  func.func @transform_2(%arg0: i32, %arg1: i32) -> (i32, i32) {
    %c0_i32 = arith.constant 0 : i32
    %c0_i32_0 = arith.constant 0 : i32
    return %c0_i32, %arg1 : i32, i32
  }
  func.func @transform_3(%arg0: i32, %arg1: i32) -> (i32, i32) {
    %c0_i32 = arith.constant 0 : i32
    %c0_i32_0 = arith.constant 0 : i32
    %c0_i32_1 = arith.constant 0 : i32
    return %c0_i32, %c0_i32_0 : i32, i32
  }
  func.func @transform_4(%arg0: i32, %arg1: i32) -> (i32, i32) {
    %c0_i32 = arith.constant 0 : i32
    %c0_i32_0 = arith.constant 0 : i32
    %c0_i32_1 = arith.constant 0 : i32
    return %c0_i32, %c0_i32_0 : i32, i32
  }
  func.func @transform_5(%arg0: i32, %arg1: i32) -> (i32, i32, i32) {
    %c0_i32 = arith.constant 0 : i32
    %c0_i32_0 = arith.constant 0 : i32
    return %arg0, %c0_i32, %arg1 : i32, i32, i32
  }
}

</mosaic_0001>

<bundles_post_ra>
// kernel: tpu_custom_call.1
= control target key start
LH: loop header
LB: loop body
LE: loop exit
PB: predicated region body
PF: predicated region fallthrough
CT: control target
= control target key end

     0   :  { %10 = vsyncpa [#allocation3], 0  ;;  %s1171_s0 = inlined_call_operand.vmem [shape: f32[2,8,64], index: 0, kind: input, shape index: {}]   ;;  %s1172_s1 = inlined_call_operand.hbm [shape: f32[2,4,256], index: 1, kind: input, shape index: {}]   ;;  %s1173_s2 = inlined_call_operand.hbm [shape: f32[64,256], index: 2, kind: input, shape index: {}]   ;;  %s1174_s3 = inlined_call_operand.vmem [shape: f32[8,4], index: 3, kind: input, shape index: {}]   ;;  %s1175_s4 = inlined_call_operand.vmem [shape: f32[8,1], index: 4, kind: input, shape index: {}]   ;;  %s1176_s5 = inlined_call_operand.hbm [shape: f32[2,8,256], index: 5, kind: output, shape index: {}]  }
   0x1   :  { %12 = vsyncpa [#allocation3 + $0x1], 0 }
   0x2   :  { %13 = vsyncpa [#allocation6], 0 }
   0x3   :  { %14 = vsyncpa [#allocation4], 0 }
   0x4   :  { %16 = vsyncpa [#allocation4 + $0x1], 0  ;;  %s942_s18 = smov 0   ;;  %s944_s19 = smov 0  }
   0x5   :  { %s946_s20 = smov 0   ;;  %s948_s21 = smov 0  }
   0x6   :  { %s950_s22 = smov 0   ;;  %s952_s23 = smov 0  }
   0x7 LB: > { %s635_s24 = sadd.s32 4294967295, %s900_s23   ;;  %s636_s25 = sadd.s32 4294967294, %s900_s23   ;;  %s900_s23 = sphi %s952_s23, %s22_s23   ;;  %s896_s22 = sphi %s950_s22, %s1200_s22   ;;  %s892_s21 = sphi %s948_s21, %s1199_s21   ;;  %s888_s20 = sphi %s946_s20, %s1198_s20   ;;  %s884_s19 = sphi %s944_s19, %s1197_s19   ;;  %s880_s18 = sphi %s942_s18, %s1196_s18  }
   0x8   : > { %p82_p0 = scmp.ne.s32.totalorder %s884_s19, %s880_s18  ;;  %p976_p1 = scmp.eq.s32.totalorder %s635_s24, 0 }
   0x9   : > { %p980_p2 = scmp.eq.s32.totalorder %s635_s24, 1  ;;  %p182_p3 = scmp.eq.s32.totalorder %s636_s25, 1 }
   0xa   : > { %s1181_s26 = scalar_select %p976_p1, 1, 0 }
   0xb   : > { %s1182_s27 = scalar_select %p980_p2, 1, 0 }
   0xc   : > { %p986_p4 = por %p976_p1, %p82_p0  ;;  %p637_p5 = scmp.ge.s32.totalorder %s900_s23, 1 }
   0xd   : > { %p991_p6 = por %p182_p3, %p82_p0  ;;  %p189_p7 = scmp.lt.s32.totalorder %s900_s23, 3 }
   0xe   : > { %s1183_s28 = scalar_select %p986_p4, 1, 0 }
   0xf   : > { %s1184_s29 = scalar_select %p991_p6, 1, 0 }
  0x10   : > { %p996_p8 = pnand %p637_p5, %p189_p7  ;;  %s902_s6 = smov [#allocation5]  }
  0x11   : > { %s204_s7 = sshll.u32 %s902_s6, 4  ;;  %s34_s9 = sadd.s32 1, %s896_s22  ;;  %s205_s7 = int_to_ptr.vmem [resolvable:$true] %s204_s7 }
  0x12   : > { %s1185_s30 = scalar_select %p996_p8, 1, 0 }
  0x13   : > { %p680_p9 = pneg %p996_p8  ;;  %s756_s12 = scalar_lea.hbm %s1173_s2, 2048 }
  0x14   : > { %p757_p12 = scmp.ne.s32.totalorder %s1173_s2, %s756_s12  ;;  %p763_p5 = scmp.lt.u32.totalorder %s756_s12, %s1173_s2 }
  0x15   : > { %p1005_p11 = pnand %p680_p9, %p976_p1 }
  0x17   : > { %p758_p13 = pneg %p1005_p11 }
  0x19   : > { %p759_p0 = pnand %p758_p13, %p757_p12 }
  0x1b   : > { %p760_p3 = pneg %p759_p0 }
  0x1d   : > { %p765_p7 = pnand %p763_p5, %p760_p3 }
  0x1f   : > { %768 = shalt.err (!%p765_p7)
}
  0x20   : > { %s769_s17 = scalar_lea.vmem %s205_s7, 2048  ;;  %p777_p1 = scmp.lt.s32.totalorder %s205_s7, %s205_s7 }
  0x21   : > { %p770_p9 = scmp.ne.s32.totalorder %s205_s7, %s769_s17  ;;  %p778_p4 = scmp.lt.s32.totalorder %s769_s17, %s769_s17 }
  0x23   : > { %p772_p10 = pnand %p770_p9, %p758_p13  ;;  %p779_p8 = por %p778_p4, %p777_p1 }
  0x25   : > { %p773_p6 = pneg %p772_p10 }
  0x27   : > { %p780_p2 = pnand %p779_p8, %p773_p6 }
  0x29   : > { %783 = shalt.err (!%p780_p2)
}
  0x2a   : > { %s903_s24 = smov 256   ;;  %s904_s25 = smov 16  }
  0x2b   : > { %683 = dma.hbm_to_vmem [thread:$0]  (!%p1005_p11), %s1173_s2, 2048, %s205_s7, [#allocation6], %s903_s24, %s903_s24, %s904_s25  }
  0x2c   : > { %p36_p1 = scmp.ge.s32.totalorder %s34_s9, 2  ;;  %s69_s11 = sadd.s32 1, %s888_s20 }
  0x2d   : > { %p76_p2 = scmp.ne.s32.totalorder %s888_s20, %s884_s19  ;;  %p77_p4 = scmp.eq.s32.totalorder %s900_s23, 0 }
  0x2e   : > { %s1202_s9 = smov (%p36_p1, %s34_s9), 0  ;;  %p1188_p8 = scmp.ne.s32.totalorder %s1182_s27, 0 }
  0x2f   : > { %p1032_p6 = por %p77_p4, %p76_p2  ;;  %s64_s8 = ssub.s32 %s896_s22, %s1202_s9 }
  0x30   : > { %p1038_p10 = por %p1188_p8, %p76_p2  ;;  %p693_p12 = scmp.lt.s32.totalorder %s900_s23, 2 }
  0x31   : > { %p67_p11 = scmp.eq.s32.totalorder %s64_s8, 0  ;;  %s231_s7 = sand.u32 1, %s888_s20  }
  0x32   : > { %s640_s14 = sshll.u32 %s231_s7, 3  ;;  %s654_s16 = sshll.u32 %s896_s22, 7 }
  0x33   : > { %s1047_s15 = scalar_select %p67_p11, %s888_s20, %s69_s11  }
  0x34   : > { %s1053_s25 = scalar_lea.hbm %s1172_s1, %s654_s16  ;;  %s235_s27 = scalar_lea.vmem [#allocation2], %s640_s14 }
  0x35   : > { %s245_s6 = sshll.u32 %s235_s27, 4  ;;  %p1059_p13 = pnand %p693_p12, %p1032_p6  ;;  %s1055_s6 = int_to_ptr.vmem [resolvable:$true] %s245_s6 }
  0x36   : > { %s232_s11 = scalar_lea.sflag [#allocation3], %s231_s7  ;;  %s784_s8 = scalar_lea.hbm %s1053_s25, 128 }
  0x37   : > { %p785_p0 = scmp.ne.s32.totalorder %s1053_s25, %s784_s8  ;;  %p786_p3 = pneg %p1059_p13 }
  0x38   : > { %s789_s17 = scalar_lea.hbm %s1172_s1, 256  ;;  %p790_p9 = scmp.lt.u32.totalorder %s1053_s25, %s1172_s1 }
  0x39   : > { %p787_p5 = pnand %p786_p3, %p785_p0  ;;  %p791_p1 = scmp.lt.u32.totalorder %s789_s17, %s784_s8 }
  0x3a   : > { %p793_p4 = scmp.lt.u32.totalorder %s784_s8, %s1053_s25 }
  0x3b   : > { %p788_p7 = pneg %p787_p5  ;;  %p792_p2 = por %p791_p1, %p790_p9 }
  0x3d   : > { %p794_p6 = por %p793_p4, %p792_p2 }
  0x3f   : > { %p795_p8 = pnand %p794_p6, %p788_p7 }
  0x41   : > { %798 = shalt.err (!%p795_p8)
}
  0x42   : > { %s799_s7 = scalar_lea.vmem %s1055_s6, 128  ;;  %s905_s27 = smov [#allocation2]  }
  0x43   : > { %p800_p12 = scmp.ne.s32.totalorder %s1055_s6, %s799_s7  ;;  %s804_s14 = sshll.u32 %s905_s27, 4  ;;  %s805_s14 = int_to_ptr.vmem [resolvable:$false] %s804_s14 }
  0x44   : > { %s806_s16 = scalar_lea.vmem %s805_s14, 256  ;;  %p807_p5 = scmp.lt.s32.totalorder %s1055_s6, %s805_s14 }
  0x45   : > { %p802_p11 = pnand %p800_p12, %p786_p3  ;;  %p808_p9 = scmp.lt.s32.totalorder %s806_s16, %s799_s7 }
  0x47   : > { %p803_p0 = pneg %p802_p11  ;;  %p809_p1 = por %p808_p9, %p807_p5 }
  0x49   : > { %p810_p2 = pnand %p809_p1, %p803_p0 }
  0x4b   : > { %813 = shalt.err (!%p810_p2)
}
  0x4c   : > { %687 = dma.hbm_to_vmem [thread:$0]  (!%p1059_p13), %s1053_s25, 128, %s1055_s6, %s232_s11  }
  0x4d   : > { %p1191_p7 = scmp.ne.s32.totalorder %s1185_s30, 0 }
  0x4e   : > { %s1091_s8 = sand.u32 (!%p1191_p7), 1, %s884_s19   ;;  %p1192_p3 = scmp.ne.s32.totalorder (!%p1191_p7), %s1183_s28, 0 }
  0x4f   : > { %254 = sbr.rel (%p1191_p7) target bundleno = 347 (0x15b), region = 40  ;;  %s644_s17 = sshll.u32 (!%p1191_p7), %s1091_s8, 3 }
  0x50   : > { %s257_s12 = scalar_lea.sflag (!%p1191_p7), [#allocation3], %s1091_s8  ;;  %s1095_s24 = scalar_lea.vmem (!%p1191_p7), [#allocation2], %s644_s17 }
  0x56   : > { %867 = dma.done.wait (%p1192_p3), %s257_s12, 128  }
  0x57   : > { %869 = vsyncadd (%p1192_p3), %s257_s12, 4294967168  ;;  %p1193_p13 = scmp.ne.s32.totalorder %s1181_s26, 0 }
  0x59   : > { %871 = dma.done.wait (%p1193_p13), [#allocation6], 2048  }
  0x5a   : > { %873 = vsyncadd (%p1193_p13), [#allocation6], 4294965248  ;;  %v906_v0 = vmov 0.0   ;;  %v907_v1 = vmov 0   ;;  %v908_v2 = vmov 1   ;;  %v304_v3 = vld [vmem:[#allocation5 + $0x8] sm:$0xff]  ;;  %v408_v32 = vlaneseq }
  0x5b   : > { %393 = vmatprep.mubr.f32.mxu0 %v906_v0  ;;  %752 = vset.pattern.permute.xlu0 %v907_v1  ;;  %v306_v4 = vld [vmem:[#allocation5 + $0x18] sm:$0xff]  ;;  %v303_v5 = vld [vmem:[#allocation5] sm:$0xff]  ;;  %v305_v7 = vld [vmem:[#allocation5 + $0x10] sm:$0xff]  ;;  %p295_p4 = scmp.lt.s32.totalorder %s892_s21, 1  ;;  %v909_v28 = vmov 2   ;;  %v910_v30 = vmov 3  }
  0x5c   : > { %753 = vset.pattern.permute.xlu1 %v908_v2  ;;  %v656_v6 = vpack.c.bf16 %v306_v4, %v304_v3  ;;  %v308_v8 = vld [vmem:[#allocation5 + $0x28] sm:$0xff]  ;;  %v310_v9 = vld [vmem:[#allocation5 + $0x38] sm:$0xff]  ;;  %v658_v10 = vpack.c.bf16 %v305_v7, %v303_v5  ;;  %v307_v12 = vld [vmem:[#allocation5 + $0x20] sm:$0xff]  ;;  %vm325_vm0 = vcmask 523264   ;;  %v409_v33 = vshrl.u32 %v408_v32, 7  ;;  %s646_s14 = sshll.u32 %s1091_s8, 4 }
  0x5d   : > { %v660_v11 = vpack.c.bf16 %v310_v9, %v308_v8  ;;  %v309_v13 = vld [vmem:[#allocation5 + $0x30] sm:$0xff]  ;;  %v312_v14 = vld [vmem:[#allocation5 + $0x48] sm:$0xff]  ;;  %v314_v15 = vld [vmem:[#allocation5 + $0x58] sm:$0xff]  ;;  %s296_s30 = scalar_select %p295_p4, %s892_s21, 1 }
  0x5e   : > { %657 = vmatprep.subr.bf16.mxu0 %v656_v6  ;;  %v662_v16 = vpack.c.bf16 %v309_v13, %v307_v12  ;;  %v664_v17 = vpack.c.bf16 %v314_v15, %v312_v14  ;;  %v311_v18 = vld [vmem:[#allocation5 + $0x40] sm:$0xff]  ;;  %v313_v19 = vld [vmem:[#allocation5 + $0x50] sm:$0xff]  ;;  %v316_v21 = vld [vmem:[#allocation5 + $0x68] sm:$0xff]  ;;  %v410_v34 = vsub.s32 0, %v409_v33  ;;  %v414_v36 = vsub.s32 4, %v409_v33  ;;  %s655_s16 = sshll.u32 %s892_s21, 8 }
  0x5f   : > { %659 = vmatpush1.bf16.msra.mxu0 %v658_v10  ;;  %v319_v20 = vld [vmem:[%s1175_s4] sm:$0xff]  ;;  %v318_v22 = vld [vmem:[#allocation5 + $0x78] sm:$0xff]  ;;  %v666_v24 = vpack.c.bf16 %v313_v19, %v311_v18  ;;  %v315_v26 = vld [vmem:[#allocation5 + $0x60] sm:$0xff]  ;;  %s647_s10 = sshll.u32 %s296_s30, 3  ;;  %v436_v37 = vsub.s32 1, %v409_v33  ;;  %v462_v38 = vsub.s32 2, %v409_v33  ;;  %s1122_s28 = scalar_lea.hbm %s1176_s5, %s655_s16 }
  0x60   : > { %661 = vmatprep.subr.bf16.mxu0 %v660_v11  ;;  %322 = vperm.xlu0 %752, %v319_v20   ;;  %v400_v23 = vld [vmem:[%s1174_s3] sm:$0xff]  ;;  %v668_v25 = vpack.c.bf16 %v318_v22, %v316_v21  ;;  %s298_s27 = scalar_lea.vmem %s1171_s0, %s647_s10  ;;  %v440_v40 = vsub.s32 5, %v409_v33  ;;  %v466_v41 = vsub.s32 6, %v409_v33  ;;  %v488_v43 = vsub.s32 3, %v409_v33  ;;  %s294_s17 = scalar_lea.vmem [#allocation7], %s646_s14 }
  0x61   : > { %431 = vperm.xlu1 %753, %v400_v23   ;;  %v317_v27 = vld [vmem:[#allocation5 + $0x70] sm:$0xff]  ;;  %v492_v46 = vsub.s32 7, %v409_v33  ;;  %s527_s12 = sshll.u32 %s294_s17, 4  ;;  %s511_s30 = scalar_lea.sflag [#allocation4], %s1091_s8  ;;  %s1124_s12 = int_to_ptr.vmem [resolvable:$true] %s527_s12 }
  0x62   : > { %v670_v29 = vpack.c.bf16 %v317_v27, %v315_v26  ;;  %v302_v31 = vld [vmem:[%s298_s27] sm:$0xff]  ;;  %s814_s25 = scalar_lea.vmem %s1124_s12, 256  ;;  %s911_s21 = smov [#allocation7]  }
  0x63   : > { %663 = vmatpush1.bf16.msra.mxu0 %v662_v16  ;;  %v401_v35 = vld [vmem:[%s1095_s24] sm:$0xff]  ;;  %p815_p6 = scmp.ne.s32.totalorder %s1124_s12, %s814_s25  ;;  %s818_s6 = sshll.u32 %s911_s21, 4  ;;  %s819_s6 = int_to_ptr.vmem [resolvable:$false] %s818_s6 }
  0x64   : > { %665 = vmatprep.subr.bf16.mxu0 %v664_v17  ;;  %404 = vperm.xlu0 %752, %v400_v23   ;;  %v411_v42 = vrot.slane %v401_v35, %v410_v34  ;;  %v415_v44 = vrot.slane %v401_v35, %v414_v36  ;;  %v437_v47 = vrot.slane %v401_v35, %v436_v37  ;;  %s820_s10 = scalar_lea.vmem %s819_s6, 512  ;;  %p821_p11 = scmp.lt.s32.totalorder %s1124_s12, %s819_s6 }
  0x65   : > { %754 = vset.pattern.permute.xlu1 %v909_v28  ;;  %v463_v48 = vrot.slane %v401_v35, %v462_v38  ;;  %v441_v49 = vrot.slane %v401_v35, %v440_v40  ;;  %v467_v50 = vrot.slane %v401_v35, %v466_v41  ;;  %v489_v52 = vrot.slane %v401_v35, %v488_v43  ;;  %p816_p8 = pnand %p815_p6, %p1038_p10  ;;  %p822_p0 = scmp.lt.s32.totalorder %s820_s10, %s814_s25 }
  0x66   : > { %457 = vperm.xlu1 %754, %v400_v23   ;;  %v421_v51 = vrot.slane %v411_v42, %v410_v34  ;;  %v425_v53 = vrot.slane %v415_v44, %v410_v34  ;;  %v493_v55 = vrot.slane %v401_v35, %v492_v46  ;;  %v447_v56 = vrot.slane %v437_v47, %v436_v37 }
  0x67   : > { %667 = vmatpush1.bf16.msra.mxu0 %v666_v24  ;;  %v473_v57 = vrot.slane %v463_v48, %v462_v38  ;;  %v451_v58 = vrot.slane %v441_v49, %v436_v37  ;;  %v477_v60 = vrot.slane %v467_v50, %v462_v38  ;;  %v499_v1 = vrot.slane %v489_v52, %v488_v43  ;;  %p817_p12 = pneg %p816_p8  ;;  %p823_p5 = por %p822_p0, %p821_p11 }
  0x68   : > { %669 = vmatprep.subr.bf16.mxu0 %v668_v25  ;;  %755 = vset.pattern.permute.xlu0 %v910_v30  ;;  %v503_v4 = vrot.slane %v493_v55, %v488_v43 }
  0x69   : > { %483 = vperm.xlu0 %755, %v400_v23   ;;  %p824_p9 = pnand %p823_p5, %p817_p12 }
  0x6b   : > { %671 = vmatpush1.bf16.msra.mxu0 %v670_v29 }
  0x6e   : > { %648 = vmatmul.mubr.msk.f32.vlgmr.msra.gmra.mrb[0].mxu0 %vm325_vm0, %v302_v31 }
  0xdf   : > { %v323_v39 = vpop.permute.xlu0 %322 }
  0xe0   : > { %v432_v45 = vpop.permute.xlu1 %431 }
  0xe1   : > { %v452_v6 = vmul.f32 %v447_v56, %v432_v45  ;;  %v453_v9 = vmul.f32 %v451_v58, %v432_v45 }
  0xe3   : > { %v405_v54 = vpop.permute.xlu0 %404 }
  0xe4   : > { %v426_v62 = vmul.f32 %v421_v51, %v405_v54  ;;  %v427_v2 = vmul.f32 %v425_v53, %v405_v54 }
  0xe5   : > { %v458_v61 = vpop.permute.xlu1 %457 }
  0xe6   : > { %v478_v8 = vmul.f32 %v473_v57, %v458_v61  ;;  %v479_v11 = vmul.f32 %v477_v60, %v458_v61 }
  0xe8   : > { %v484_v5 = vpop.permute.xlu0 %483 }
  0xe9   : > { %v504_v13 = vmul.f32 %v499_v1, %v484_v5  ;;  %v505_v15 = vmul.f32 %v503_v4, %v484_v5 }
 0x141   : > { %v395_v59 = vpop.f32.mrb[0].mxu0 }
 0x142   : > { %v396_v63 = vadd.f32 %v395_v59, %v323_v39  ;;  %v397_v0 = vpop.f32.mrb[1].mxu0 }
 0x143   : > { %v398_v3 = vadd.f32 %v397_v0, %v323_v39 }
 0x144   : > { %v428_v7 = vadd.f32 %v426_v62, %v396_v63 }
 0x145   : > { %v429_v10 = vadd.f32 %v427_v2, %v398_v3 }
 0x146   : > { %v454_v12 = vadd.f32 %v452_v6, %v428_v7 }
 0x147   : > { %v455_v14 = vadd.f32 %v453_v9, %v429_v10 }
 0x148   : > { %v480_v16 = vadd.f32 %v478_v8, %v454_v12 }
 0x149   : > { %v481_v17 = vadd.f32 %v479_v11, %v455_v14 }
 0x14a   : > { %v506_v18 = vadd.f32 %v504_v13, %v480_v16 }
 0x14b   : > { %v507_v19 = vadd.f32 %v505_v15, %v481_v17 }
 0x14c   : > { %508 = vst [vmem:[%s294_s17] sm:$0xff] %v506_v18 }
 0x14d   : > { %509 = vst [vmem:[%s294_s17 + $0x8] sm:$0xff] %v507_v19 }
 0x14e   : > { %827 = shalt.err (!%p824_p9)
}
 0x14f   : > { %s828_s8 = scalar_lea.hbm %s1122_s28, 256  ;;  %s832_s27 = scalar_lea.hbm %s1176_s5, 512 }
 0x150   : > { %p829_p1 = scmp.ne.s32.totalorder %s1122_s28, %s828_s8  ;;  %p833_p3 = scmp.lt.u32.totalorder %s1122_s28, %s1176_s5 }
 0x151   : > { %p834_p13 = scmp.lt.u32.totalorder %s832_s27, %s828_s8  ;;  %p836_p6 = scmp.lt.u32.totalorder %s828_s8, %s1122_s28 }
 0x152   : > { %p830_p2 = pnand %p829_p1, %p1038_p10 }
 0x153   : > { %p835_p4 = por %p834_p13, %p833_p3 }
 0x154   : > { %p831_p7 = pneg %p830_p2 }
 0x155   : > { %p837_p8 = por %p836_p6, %p835_p4 }
 0x157   : > { %p838_p12 = pnand %p837_p8, %p831_p7 }
 0x159   : > { %841 = shalt.err (!%p838_p12)
}
 0x15a   : > { %678 = dma.vmem_to_hbm [thread:$0]  (%p1038_p10), %s1124_s12, 256, %s1122_s28, %s511_s30  }
 0x15b PF: > { %s539_s17 = sand.u32 1, %s880_s18   ;;  %p1194_p11 = scmp.ne.s32.totalorder %s1184_s29, 0 }
 0x15c   : > { %p1195_p0 = scmp.ge.s32.totalorder %s900_s23, 2  ;;  %s540_s24 = scalar_lea.sflag [#allocation4], %s539_s17 }
 0x15e   : > { %p689_p5 = pnand %p1195_p0, %p1194_p11 }
 0x160   : > { %875 = dma.done.wait (!%p689_p5), %s540_s24, 256  }
 0x161   : > { %877 = vsyncadd (!%p689_p5), %s540_s24, 4294967040  ;;  %s22_s23 = sadd.s32 1, %s900_s23   ;;  %s1196_s18 = smov %s884_s19 }
 0x162   : > { %p19_p9 = scmp.ge.s32.totalorder %s22_s23, 4   ;;  %s1197_s19 = smov %s888_s20 }
 0x163   : > { %s1198_s20 = smov %s1047_s15  ;;  %s1199_s21 = smov %s896_s22 }
 0x164   : > { %s1200_s22 = smov %s1202_s9  ;;  %21 = sbr.rel (!%p19_p9) target bundleno = 7 (0x7), region = 93 }
 0x16b   :  { %545 = vsyncpa [#allocation3], 1 }
 0x16c   :  { %547 = vsyncpa [#allocation3 + $0x1], 1 }
 0x16d   :  { %548 = vsyncpa [#allocation6], 1 }
 0x16e   :  { %549 = vsyncpa [#allocation4], 1 }
 0x16f   :  { %551 = vsyncpa [#allocation4 + $0x1], 1 }

</bundles_post_ra>
